<compile_context>
chip_gen: v6e
topology: v6e:2x2x1
jax: 0.10.0
libtpu: 0.0.40
codegen_flags: <defaults>
</compile_context>

<pallas_src>
import functools

import jax
import jax.numpy as jnp
from jax.experimental import pallas as pl
from jax.experimental.pallas import tpu as pltpu

N_OBSERVATIONS = 192
HIDDEN = 128
N_ACTIONS = 36
N_OUT_PAD = 128          # lane-dense padded output width (>= N_ACTIONS)
DEFAULT_TB = 512         # batch tile: multiple of 256 (v6e MXU) and of 8


def _dqn_kernel(x_ref, w1_ref, b1_ref, w2_ref, b2_ref, w3_ref, b3_ref, o_ref):
    """One batch tile of the forward pass.

    x tile:  (TB, 192) bf16
    weights: bf16, VMEM-resident across all grid steps (constant index_map)
    biases:  f32
    output:  (TB, 128) f32 (lane-dense; cols 36..127 are zero-padded garbage
             from the zero-padded w3/b3 and are sliced off by the wrapper).
    """
    x = x_ref[...]  # bf16

    # layer1: (TB, 192) @ (192, 128) + (1, 128), ReLU (f32 accumulation)
    h1 = jnp.dot(x, w1_ref[...], preferred_element_type=jnp.float32) + b1_ref[...]
    h1 = jnp.maximum(h1, 0.0).astype(jnp.bfloat16)

    # layer2: (TB, 128) @ (128, 128) + (1, 128), ReLU
    h2 = jnp.dot(h1, w2_ref[...], preferred_element_type=jnp.float32) + b2_ref[...]
    h2 = jnp.maximum(h2, 0.0).astype(jnp.bfloat16)

    # layer3: (TB, 128) @ (128, 128-padded) + (1, 128-padded)  (no activation)
    out = jnp.dot(h2, w3_ref[...], preferred_element_type=jnp.float32) + b3_ref[...]

    o_ref[...] = out.astype(o_ref.dtype)


def _round_up(x, m):
    return ((x + m - 1) // m) * m


def prepare_params(w1, b1, w2, b2, w3, b3):
    """One-time preprocessing: cast weights to bf16, zero-pad layer-3 to a
    lane-dense 128-wide output. Biases stay f32 (elementwise add in f32)."""
    w1p = w1.astype(jnp.bfloat16)
    w2p = w2.astype(jnp.bfloat16)
    w3p = jnp.pad(w3, ((0, 0), (0, N_OUT_PAD - N_ACTIONS))).astype(jnp.bfloat16)
    b3p = jnp.pad(b3, ((0, 0), (0, N_OUT_PAD - N_ACTIONS))).astype(jnp.float32)
    return (w1p, b1.astype(jnp.float32), w2p, b2.astype(jnp.float32), w3p, b3p)


@functools.partial(jax.jit, static_argnames=("tb",))
def dqn_forward(x, w1, b1, w2, b2, w3, b3, *, tb=DEFAULT_TB):
    """x: (B, 192) any float dtype. Weights/biases as returned by prepare_params.
    Returns (B, N_ACTIONS) float32."""
    B = x.shape[0]

    # Choose the batch tile: at least the (8, 128) sublane granularity, at most
    # `tb`; pad the batch up to a whole number of tiles.
    TB = min(tb, _round_up(B, 8))
    B_pad = _round_up(B, TB)

    x = x.astype(jnp.bfloat16)
    if B_pad != B:
        x = jnp.pad(x, ((0, B_pad - B), (0, 0)))

    grid = (pl.cdiv(B_pad, TB),)
    const = lambda i: (0, 0)  # weights/biases: same block every step -> resident

    out = pl.pallas_call(
        _dqn_kernel,
        out_shape=jax.ShapeDtypeStruct((B_pad, N_OUT_PAD), jnp.float32),
        grid=grid,
        in_specs=[
            pl.BlockSpec((TB, N_OBSERVATIONS), lambda i: (i, 0)),   # x tile
            pl.BlockSpec((N_OBSERVATIONS, HIDDEN), const),          # w1
            pl.BlockSpec((1, HIDDEN), const),                       # b1
            pl.BlockSpec((HIDDEN, HIDDEN), const),                  # w2
            pl.BlockSpec((1, HIDDEN), const),                       # b2
            pl.BlockSpec((HIDDEN, N_OUT_PAD), const),               # w3 (padded)
            pl.BlockSpec((1, N_OUT_PAD), const),                    # b3 (padded)
        ],
        out_specs=pl.BlockSpec((TB, N_OUT_PAD), lambda i: (i, 0)),
        compiler_params=pltpu.CompilerParams(
            dimension_semantics=("parallel",),
        ),
    )(x, w1, b1, w2, b2, w3, b3)

    return out[:B, :N_ACTIONS]


def init_params(key):
    """Deterministic init matching torch.nn.Linear's default:
    U(-1/sqrt(fan_in), 1/sqrt(fan_in)) for both weights and biases.
    Weights are stored as (in_features, out_features); biases as (1, out)."""
    dims = [(N_OBSERVATIONS, HIDDEN), (HIDDEN, HIDDEN), (HIDDEN, N_ACTIONS)]
    params = []
    for (fan_in, fan_out) in dims:
        key, kw, kb = jax.random.split(key, 3)
        bound = 1.0 / (fan_in ** 0.5)
        w = jax.random.uniform(kw, (fan_in, fan_out), jnp.float32, -bound, bound)
        b = jax.random.uniform(kb, (1, fan_out), jnp.float32, -bound, bound)
        params.extend([w, b])
    return tuple(params)


def reference_forward(x, w1, b1, w2, b2, w3, b3):
    """Pure-JAX f32 reference (matches the PyTorch module semantics)."""
    h1 = jax.nn.relu(x @ w1 + b1)
    h2 = jax.nn.relu(h1 @ w2 + b2)
    return h2 @ w3 + b3


if __name__ == "__main__":
    key = jax.random.PRNGKey(0)
    key, kx = jax.random.split(key)

    batch = 8
    x = jax.random.normal(kx, (batch, N_OBSERVATIONS), jnp.float32)

    raw_params = init_params(key)
    params = prepare_params(*raw_params)

    out = dqn_forward(x, *params)
    out = jax.block_until_ready(out)

    ref = reference_forward(x, *raw_params)
    assert out.shape == (batch, N_ACTIONS), out.shape
    # bf16 MXU inputs with f32 accumulation -> loosen tolerance vs the f32 ref.
    assert jnp.allclose(out, ref, atol=5e-2, rtol=5e-2), float(
        jnp.max(jnp.abs(out - ref))
    )

    print("KERNEL_OK")
</pallas_src>

<mosaic_0001>
module attributes {stable_mosaic.version = 11 : i64} {
  func.func @_dqn_kernel(%arg0: i32, %arg1: memref<8x192xbf16, #tpu.memory_space<vmem>>, %arg2: memref<192x128xbf16, #tpu.memory_space<vmem>>, %arg3: memref<1x128xf32, #tpu.memory_space<vmem>>, %arg4: memref<128x128xbf16, #tpu.memory_space<vmem>>, %arg5: memref<1x128xf32, #tpu.memory_space<vmem>>, %arg6: memref<128x128xbf16, #tpu.memory_space<vmem>>, %arg7: memref<1x128xf32, #tpu.memory_space<vmem>>, %arg8: memref<8x128xf32, #tpu.memory_space<vmem>>) attributes {dimension_semantics = [#tpu.dimension_semantics<parallel>], iteration_bounds = array<i64: 1>, scalar_prefetch = 0 : i64, scratch_operands = 0 : i64, tpu.core_type = #tpu.core_type<tc>, window_params = [{transform_indices = @transform_0, window_bounds = array<i64: 8, 192>}, {pipeline_mode = #tpu.pipeline_mode<synchronous>, transform_indices = @transform_1, window_bounds = array<i64: 192, 128>}, {pipeline_mode = #tpu.pipeline_mode<synchronous>, transform_indices = @transform_2, window_bounds = array<i64: 1, 128>}, {pipeline_mode = #tpu.pipeline_mode<synchronous>, transform_indices = @transform_3, window_bounds = array<i64: 128, 128>}, {pipeline_mode = #tpu.pipeline_mode<synchronous>, transform_indices = @transform_4, window_bounds = array<i64: 1, 128>}, {pipeline_mode = #tpu.pipeline_mode<synchronous>, transform_indices = @transform_5, window_bounds = array<i64: 128, 128>}, {pipeline_mode = #tpu.pipeline_mode<synchronous>, transform_indices = @transform_6, window_bounds = array<i64: 1, 128>}, {transform_indices = @transform_7, window_bounds = array<i64: 8, 128>}]} {
    %c0 = arith.constant 0 : index
    %c0_0 = arith.constant 0 : index
    %0 = vector.load %arg1[%c0, %c0_0] : memref<8x192xbf16, #tpu.memory_space<vmem>>, vector<8x192xbf16>
    %c0_1 = arith.constant 0 : index
    %c0_2 = arith.constant 0 : index
    %1 = vector.load %arg2[%c0_1, %c0_2] : memref<192x128xbf16, #tpu.memory_space<vmem>>, vector<192x128xbf16>
    %cst = arith.constant dense<0.000000e+00> : vector<8x128xf32>
    %2 = tpu.matmul %0, %1, %cst {dimension_numbers = #tpu.dot_dimension_numbers<[1], [0], [0], [1], [0, 0, 1, 1], [], []>} : vector<8x192xbf16>, vector<192x128xbf16>, vector<8x128xf32> -> vector<8x128xf32>
    %c0_3 = arith.constant 0 : index
    %c0_4 = arith.constant 0 : index
    %3 = vector.load %arg3[%c0_3, %c0_4] : memref<1x128xf32, #tpu.memory_space<vmem>>, vector<1x128xf32>
    %4 = vector.broadcast %3 : vector<1x128xf32> to vector<8x128xf32>
    %5 = arith.addf %2, %4 : vector<8x128xf32>
    %cst_5 = arith.constant 0.000000e+00 : f32
    %6 = vector.broadcast %cst_5 : f32 to vector<8x128xf32>
    %7 = arith.maximumf %5, %6 : vector<8x128xf32>
    %8 = arith.truncf %7 : vector<8x128xf32> to vector<8x128xbf16>
    %c0_6 = arith.constant 0 : index
    %c0_7 = arith.constant 0 : index
    %9 = vector.load %arg4[%c0_6, %c0_7] : memref<128x128xbf16, #tpu.memory_space<vmem>>, vector<128x128xbf16>
    %cst_8 = arith.constant dense<0.000000e+00> : vector<8x128xf32>
    %10 = tpu.matmul %8, %9, %cst_8 {dimension_numbers = #tpu.dot_dimension_numbers<[1], [0], [0], [1], [0, 0, 1, 1], [], []>} : vector<8x128xbf16>, vector<128x128xbf16>, vector<8x128xf32> -> vector<8x128xf32>
    %c0_9 = arith.constant 0 : index
    %c0_10 = arith.constant 0 : index
    %11 = vector.load %arg5[%c0_9, %c0_10] : memref<1x128xf32, #tpu.memory_space<vmem>>, vector<1x128xf32>
    %12 = vector.broadcast %11 : vector<1x128xf32> to vector<8x128xf32>
    %13 = arith.addf %10, %12 : vector<8x128xf32>
    %cst_11 = arith.constant 0.000000e+00 : f32
    %14 = vector.broadcast %cst_11 : f32 to vector<8x128xf32>
    %15 = arith.maximumf %13, %14 : vector<8x128xf32>
    %16 = arith.truncf %15 : vector<8x128xf32> to vector<8x128xbf16>
    %c0_12 = arith.constant 0 : index
    %c0_13 = arith.constant 0 : index
    %17 = vector.load %arg6[%c0_12, %c0_13] : memref<128x128xbf16, #tpu.memory_space<vmem>>, vector<128x128xbf16>
    %cst_14 = arith.constant dense<0.000000e+00> : vector<8x128xf32>
    %18 = tpu.matmul %16, %17, %cst_14 {dimension_numbers = #tpu.dot_dimension_numbers<[1], [0], [0], [1], [0, 0, 1, 1], [], []>} : vector<8x128xbf16>, vector<128x128xbf16>, vector<8x128xf32> -> vector<8x128xf32>
    %c0_15 = arith.constant 0 : index
    %c0_16 = arith.constant 0 : index
    %19 = vector.load %arg7[%c0_15, %c0_16] : memref<1x128xf32, #tpu.memory_space<vmem>>, vector<1x128xf32>
    %20 = vector.broadcast %19 : vector<1x128xf32> to vector<8x128xf32>
    %21 = arith.addf %18, %20 : vector<8x128xf32>
    %c0_17 = arith.constant 0 : index
    %c0_18 = arith.constant 0 : index
    %22 = vector.load %arg8[%c0_17, %c0_18] : memref<8x128xf32, #tpu.memory_space<vmem>>, vector<8x128xf32>
    tpu.vector_store %arg8[%c0_17, %c0_18], %21 {strides = array<i32>} : memref<8x128xf32, #tpu.memory_space<vmem>>, vector<8x128xf32>,
    return
  }
  func.func @transform_0(%arg0: i32) -> (i32, i32) {
    %c0_i32 = arith.constant 0 : i32
    %c0_i32_0 = arith.constant 0 : i32
    return %arg0, %c0_i32 : i32, i32
  }
  func.func @transform_1(%arg0: i32) -> (i32, i32) {
    %c0_i32 = arith.constant 0 : i32
    %c0_i32_0 = arith.constant 0 : i32
    %c0_i32_1 = arith.constant 0 : i32
    return %c0_i32, %c0_i32_0 : i32, i32
  }
  func.func @transform_2(%arg0: i32) -> (i32, i32) {
    %c0_i32 = arith.constant 0 : i32
    %c0_i32_0 = arith.constant 0 : i32
    %c0_i32_1 = arith.constant 0 : i32
    return %c0_i32, %c0_i32_0 : i32, i32
  }
  func.func @transform_3(%arg0: i32) -> (i32, i32) {
    %c0_i32 = arith.constant 0 : i32
    %c0_i32_0 = arith.constant 0 : i32
    %c0_i32_1 = arith.constant 0 : i32
    return %c0_i32, %c0_i32_0 : i32, i32
  }
  func.func @transform_4(%arg0: i32) -> (i32, i32) {
    %c0_i32 = arith.constant 0 : i32
    %c0_i32_0 = arith.constant 0 : i32
    %c0_i32_1 = arith.constant 0 : i32
    return %c0_i32, %c0_i32_0 : i32, i32
  }
  func.func @transform_5(%arg0: i32) -> (i32, i32) {
    %c0_i32 = arith.constant 0 : i32
    %c0_i32_0 = arith.constant 0 : i32
    %c0_i32_1 = arith.constant 0 : i32
    return %c0_i32, %c0_i32_0 : i32, i32
  }
  func.func @transform_6(%arg0: i32) -> (i32, i32) {
    %c0_i32 = arith.constant 0 : i32
    %c0_i32_0 = arith.constant 0 : i32
    %c0_i32_1 = arith.constant 0 : i32
    return %c0_i32, %c0_i32_0 : i32, i32
  }
  func.func @transform_7(%arg0: i32) -> (i32, i32) {
    %c0_i32 = arith.constant 0 : i32
    %c0_i32_0 = arith.constant 0 : i32
    return %arg0, %c0_i32 : i32, i32
  }
}

</mosaic_0001>

<bundles_post_ra>
// kernel: dqn_forward.1
= control target key start
LH: loop header
LB: loop body
LE: loop exit
PB: predicated region body
PF: predicated region fallthrough
CT: control target
= control target key end

     0   :  { %12 = vsyncpa [#allocation3], 0  ;;  %s774_s0 = inlined_call_operand.vmem [shape: bf16[8,192], index: 0, kind: input, shape index: {}]   ;;  %s775_s1 = inlined_call_operand.hbm [shape: bf16[192,128], index: 1, kind: input, shape index: {}]   ;;  %s776_s2 = inlined_call_operand.vmem [shape: f32[1,128], index: 2, kind: input, shape index: {}]   ;;  %s777_s3 = inlined_call_operand.hbm [shape: bf16[128,128], index: 3, kind: input, shape index: {}]   ;;  %s778_s4 = inlined_call_operand.vmem [shape: f32[1,128], index: 4, kind: input, shape index: {}]   ;;  %s779_s5 = inlined_call_operand.hbm [shape: bf16[128,128], index: 5, kind: input, shape index: {}]   ;;  %s780_s6 = inlined_call_operand.vmem [shape: f32[1,128], index: 6, kind: input, shape index: {}]   ;;  %s781_s7 = inlined_call_operand.hbm [shape: f32[8,128], index: 7, kind: output, shape index: {}]  }
   0x1   :  { %13 = vsyncpa [#allocation6], 0 }
   0x2   :  { %14 = vsyncpa [#allocation4], 0  ;;  %s683_s24 = smov [#allocation5]   ;;  %s684_s26 = smov [#allocation2]  }
   0x3   :  { %s36_s25 = sshll.u32 %s683_s24, 4  ;;  %s22_s27 = sshll.u32 %s684_s26, 4  ;;  %s37_s25 = int_to_ptr.vmem [resolvable:$true] %s36_s25  ;;  %s23_s27 = int_to_ptr.vmem [resolvable:$true] %s22_s27 }
   0x4   :  { %s605_s28 = scalar_lea.vmem %s37_s25, 1024  ;;  %p610_p1 = scmp.lt.s32.totalorder %s37_s25, %s37_s25 }
   0x5   :  { %p606_p0 = scmp.ne.s32.totalorder %s37_s25, %s605_s28  ;;  %p611_p2 = scmp.lt.s32.totalorder %s605_s28, %s605_s28 }
   0x7   :  { %p612_p3 = por %p611_p2, %p610_p1 }
   0x9   :  { %p613_p4 = pnand %p612_p3, %p606_p0 }
   0xb   :  { %616 = shalt.err (!%p613_p4)
}
   0xc   :  { %s685_s29 = smov 64   ;;  %s686_s30 = smov 4  }
   0xd   :  { %42 = dma.hbm_to_vmem [thread:$0]  %s777_s3, 1024, %s37_s25, [#allocation6], %s685_s29, %s685_s29, %s686_s30  }
   0xe   :  { %s625_s10 = scalar_lea.vmem %s23_s27, 1536  ;;  %p630_p6 = scmp.lt.s32.totalorder %s23_s27, %s23_s27 }
   0xf   :  { %p626_p5 = scmp.ne.s32.totalorder %s23_s27, %s625_s10  ;;  %p631_p7 = scmp.lt.s32.totalorder %s625_s10, %s625_s10 }
  0x11   :  { %p632_p8 = por %p631_p7, %p630_p6 }
  0x13   :  { %p633_p9 = pnand %p632_p8, %p626_p5 }
  0x15   :  { %636 = shalt.err (!%p633_p9)
}
  0x16   :  { %28 = dma.hbm_to_vmem [thread:$0]  %s775_s1, 1536, %s23_s27, [#allocation3], %s685_s29, %s685_s29, %s686_s30  }
  0x17   :  { %s687_s13 = smov [#allocation7]  }
  0x18   :  { %s50_s14 = sshll.u32 %s687_s13, 4  ;;  %s51_s14 = int_to_ptr.vmem [resolvable:$true] %s50_s14 }
  0x19   :  { %s645_s15 = scalar_lea.vmem %s51_s14, 1024  ;;  %p650_p11 = scmp.lt.s32.totalorder %s51_s14, %s51_s14 }
  0x1a   :  { %p646_p10 = scmp.ne.s32.totalorder %s51_s14, %s645_s15  ;;  %p651_p12 = scmp.lt.s32.totalorder %s645_s15, %s645_s15 }
  0x1c   :  { %p652_p13 = por %p651_p12, %p650_p11 }
  0x1e   :  { %p653_p0 = pnand %p652_p13, %p646_p10 }
  0x20   :  { %656 = shalt.err (!%p653_p0)
}
  0x21   :  { %56 = dma.hbm_to_vmem [thread:$0]  %s779_s5, 1024, %s51_s14, [#allocation6], %s685_s29, %s685_s29, %s686_s30  }
  0x22   :  { %677 = dma.done.wait [#allocation3], 1536  }
  0x23   :  { %678 = vsyncadd [#allocation3], 4294965760 }
  0x24   :  { %679 = dma.done.wait [#allocation6], 2048  }
  0x25   :  { %680 = vsyncadd [#allocation6], 4294965248  ;;  %v688_v0 = vmov 0   ;;  %v689_v1 = vmov 0.0   ;;  %v567_v2 = vld [vmem:[#allocation2 + $0x38] sm:$0xff]   ;;  %v568_v3 = vld [vmem:[#allocation2 + $0x30] sm:$0xff]  }
  0x26   :  { %183 = vmatprep.subr.bf16.mxu0 %v688_v0  ;;  %518 = vmatprep.subr.bf16.mxu1 %v689_v1  ;;  %v569_v4 = vld [vmem:[#allocation2 + $0x28] sm:$0xff]   ;;  %v570_v5 = vld [vmem:[#allocation2 + $0x20] sm:$0xff]   ;;  %vm179_vm0 = vcmask 523264   ;;  %v581_v8 = vld [vmem:[#allocation5 + $0x38] sm:$0xff]   ;;  %vm690_vm1 = vmmov 0   ;;  %s691_s21 = smov [#allocation8]  }
  0x27   :  { %184 = vmatpush1.bf16.msra.mxu0 %v567_v2  ;;  %v69_v6 = vld [vmem:[%s774_s0] sm:$0xff]  ;;  %v571_v9 = vld [vmem:[#allocation2 + $0x18] sm:$0xff]   ;;  %519 = vmatpush3.bf16.msra.mxu1 %v581_v8  ;;  %v582_v10 = vld [vmem:[#allocation5 + $0x30] sm:$0xff]   ;;  %s456_s22 = sshll.u32 %s691_s21, 4  ;;  %s457_s22 = int_to_ptr.vmem [resolvable:$true] %s456_s22 }
  0x28   :  { %185 = vmatprep.subr.bf16.mxu0 %v688_v0  ;;  %v468_v7 = vcombine.high %v69_v6, %v69_v6  ;;  %520 = vmatprep.subr.bf16.mxu1 %v689_v1  ;;  %v572_v11 = vld [vmem:[#allocation2 + $0x10] sm:$0xff]   ;;  %v583_v12 = vld [vmem:[#allocation5 + $0x28] sm:$0xff]   ;;  %v584_v14 = vld [vmem:[#allocation5 + $0x20] sm:$0xff]   ;;  %v467_v22 = vcombine.low %v69_v6, %v69_v6  ;;  %p662_p2 = scmp.lt.s32.totalorder %s457_s22, %s457_s22 }
  0x29   :  { %v573_v13 = vld [vmem:[#allocation2 + $0x8] sm:$0xff]   ;;  %v574_v15 = vld [vmem:[#allocation2] sm:$0xff]   ;;  %v585_v16 = vld [vmem:[#allocation5 + $0x18] sm:$0xff]   ;;  %534 = vmatprep.mubr.msk.bf16.mxu1 %vm690_vm1, %v689_v1 }
  0x2a   :  { %481 = vmatprep.mubr.msk.bf16.mxu0 %vm179_vm0, %v468_v7  ;;  %v575_v17 = vld [vmem:[#allocation2 + $0x58] sm:$0xff]   ;;  %v586_v18 = vld [vmem:[#allocation5 + $0x10] sm:$0xff]   ;;  %v577_v20 = vld [vmem:[#allocation2 + $0x48] sm:$0xff]  }
  0x2b   :  { %186 = vmatpush1.bf16.msra.mxu0 %v568_v3  ;;  %521 = vmatpush3.bf16.msra.mxu1 %v582_v10  ;;  %v576_v19 = vld [vmem:[#allocation2 + $0x50] sm:$0xff]   ;;  %v578_v21 = vld [vmem:[#allocation2 + $0x40] sm:$0xff]   ;;  %v587_v23 = vld [vmem:[#allocation5 + $0x8] sm:$0xff]  }
  0x2c   :  { %187 = vmatprep.subr.bf16.mxu0 %v688_v0  ;;  %522 = vmatprep.subr.bf16.mxu1 %v689_v1  ;;  %v588_v24 = vld [vmem:[#allocation5] sm:$0xff]   ;;  %v589_v31 = vld [vmem:[#allocation7 + $0x38] sm:$0xff]   ;;  %v590_v34 = vld [vmem:[#allocation7 + $0x30] sm:$0xff]  }
  0x2d   :  { %v466_v25 = vld [vmem:[%s776_s2] ss:$0 sm:$0xff]  ;;  %v591_v35 = vld [vmem:[#allocation7 + $0x28] sm:$0xff]   ;;  %v593_v37 = vld [vmem:[#allocation7 + $0x18] sm:$0xff]  }
  0x2e   :  { %v592_v36 = vld [vmem:[#allocation7 + $0x20] sm:$0xff]   ;;  %v594_v38 = vld [vmem:[#allocation7 + $0x10] sm:$0xff]   ;;  %v595_v39 = vld [vmem:[#allocation7 + $0x8] sm:$0xff]  }
  0x2f   :  { %188 = vmatpush1.bf16.msra.mxu0 %v569_v4  ;;  %523 = vmatpush3.bf16.msra.mxu1 %v583_v12  ;;  %v596_v40 = vld [vmem:[#allocation7] sm:$0xff]  }
  0x30   :  { %189 = vmatprep.subr.bf16.mxu0 %v688_v0  ;;  %524 = vmatprep.subr.bf16.mxu1 %v689_v1  ;;  %v482_v41 = vld [vmem:[%s778_s4] ss:$0 sm:$0xff]  ;;  %s657_s4 = scalar_lea.vmem %s457_s22, 128 }
  0x31   :  { %v491_v49 = vld [vmem:[%s780_s6] ss:$0 sm:$0xff]  ;;  %p658_p1 = scmp.ne.s32.totalorder %s457_s22, %s657_s4  ;;  %p663_p3 = scmp.lt.s32.totalorder %s657_s4, %s657_s4 }
  0x33   :  { %190 = vmatpush1.bf16.msra.mxu0 %v570_v5  ;;  %525 = vmatpush3.bf16.msra.mxu1 %v584_v14  ;;  %p664_p4 = por %p663_p3, %p662_p2 }
  0x34   :  { %191 = vmatprep.subr.bf16.mxu0 %v688_v0  ;;  %526 = vmatprep.subr.bf16.mxu1 %v689_v1 }
  0x35   :  { %p665_p5 = pnand %p664_p4, %p658_p1 }
  0x37   :  { %192 = vmatpush1.bf16.msra.mxu0 %v571_v9  ;;  %527 = vmatpush3.bf16.msra.mxu1 %v585_v16 }
  0x38   :  { %193 = vmatprep.subr.bf16.mxu0 %v688_v0  ;;  %528 = vmatprep.subr.bf16.mxu1 %v689_v1 }
  0x3b   :  { %194 = vmatpush1.bf16.msra.mxu0 %v572_v11  ;;  %529 = vmatpush3.bf16.msra.mxu1 %v586_v18 }
  0x3c   :  { %195 = vmatprep.subr.bf16.mxu0 %v688_v0  ;;  %530 = vmatprep.subr.bf16.mxu1 %v689_v1 }
  0x3f   :  { %196 = vmatpush1.bf16.msra.mxu0 %v573_v13  ;;  %531 = vmatpush3.bf16.msra.mxu1 %v587_v23 }
  0x40   :  { %197 = vmatprep.subr.bf16.mxu0 %v688_v0  ;;  %532 = vmatprep.subr.bf16.mxu1 %v689_v1 }
  0x43   :  { %198 = vmatpush1.bf16.msra.mxu0 %v574_v15  ;;  %533 = vmatpush3.bf16.msra.mxu1 %v588_v24 }
  0x44   :  { %207 = vmatprep.subr.bf16.mxu0 %v688_v0  ;;  %538 = vmatprep.subr.bf16.mxu1 %v689_v1 }
  0x47   :  { %208 = vmatpush2.bf16.msra.mxu0 %v575_v17 }
  0x48   :  { %209 = vmatprep.subr.bf16.mxu0 %v688_v0 }
  0x4b   :  { %210 = vmatpush2.bf16.msra.mxu0 %v576_v19 }
  0x4c   :  { %211 = vmatprep.subr.bf16.mxu0 %v688_v0 }
  0x4f   :  { %212 = vmatpush2.bf16.msra.mxu0 %v577_v20 }
  0x50   :  { %213 = vmatprep.subr.bf16.mxu0 %v688_v0 }
  0x53   :  { %214 = vmatpush2.bf16.msra.mxu0 %v578_v21 }
  0x56   :  { %216 = vmatmul.mubr.bf16.vlgmr.msra.gmra.mxu0 %v467_v22 }
 0x116   :  { %v217_v26 = vpop.f32.mrf.mxu0 }
 0x117   :  { %v218_v27 = vadd.f32 %v466_v25, %v217_v26 }
 0x118   :  { %v219_v28 = vpop.f32.mrf.mxu0 }
 0x119   :  { %v223_v29 = vmax.f32 %v218_v27, 0.0 }
 0x11a   :  { %v220_v30 = vpop.f32.mrf.mxu0 }
 0x11b   :  { %v224_v32 = vpack.c.bf16 %v223_v29, %v223_v29 }
 0x11c   :  { %v221_v33 = vpop.f32.mrf.mxu0 }
 0x11d   :  { %535 = vmatmul.mubr.bf16.vlgmr.msra.gmra.mxu1 %v224_v32 }
 0x11e   :  { %539 = vmatpush3.bf16.msra.mxu1 %v589_v31  ;;  %554 = vmatprep.mubr.msk.bf16.mxu1 %vm690_vm1, %v689_v1 }
 0x11f   :  { %540 = vmatprep.subr.bf16.mxu1 %v689_v1 }
 0x122   :  { %541 = vmatpush3.bf16.msra.mxu1 %v590_v34 }
 0x123   :  { %542 = vmatprep.subr.bf16.mxu1 %v689_v1 }
 0x126   :  { %543 = vmatpush3.bf16.msra.mxu1 %v591_v35 }
 0x127   :  { %544 = vmatprep.subr.bf16.mxu1 %v689_v1 }
 0x12a   :  { %545 = vmatpush3.bf16.msra.mxu1 %v592_v36 }
 0x12b   :  { %546 = vmatprep.subr.bf16.mxu1 %v689_v1 }
 0x12e   :  { %547 = vmatpush3.bf16.msra.mxu1 %v593_v37 }
 0x12f   :  { %548 = vmatprep.subr.bf16.mxu1 %v689_v1 }
 0x132   :  { %549 = vmatpush3.bf16.msra.mxu1 %v594_v38 }
 0x133   :  { %550 = vmatprep.subr.bf16.mxu1 %v689_v1 }
 0x136   :  { %551 = vmatpush3.bf16.msra.mxu1 %v595_v39 }
 0x137   :  { %552 = vmatprep.subr.bf16.mxu1 %v689_v1 }
 0x13a   :  { %553 = vmatpush3.bf16.msra.mxu1 %v596_v40 }
 0x1dd   :  { %v330_v42 = vpop.f32.mrf.mxu1 }
 0x1de   :  { %v331_v43 = vadd.f32 %v482_v41, %v330_v42 }
 0x1df   :  { %v536_v44 = vpop.f32.mrf.mxu1 }
 0x1e0   :  { %v336_v45 = vmax.f32 %v331_v43, 0.0 }
 0x1e1   :  { %v333_v46 = vpop.f32.mrf.mxu1 }
 0x1e2   :  { %v337_v47 = vpack.c.bf16 %v336_v45, %v336_v45 }
 0x1e3   :  { %v537_v48 = vpop.f32.mrf.mxu1 }
 0x1e4   :  { %555 = vmatmul.mubr.bf16.vlgmr.msra.gmra.mxu1 %v337_v47 }
 0x2a4   :  { %v443_v50 = vpop.f32.mrf.mxu1 }
 0x2a5   :  { %v444_v51 = vadd.f32 %v491_v49, %v443_v50 }
 0x2a6   :  { %v556_v52 = vpop.f32.mrf.mxu1 }
 0x2a7   :  { %449 = vst [vmem:[#allocation8] sm:$0xff] %v444_v51 }
 0x2a8   :  { %v446_v53 = vpop.f32.mrf.mxu1 }
 0x2a9   :  { %668 = shalt.err (!%p665_p5)
}
 0x2aa   :  { %459 = dma.vmem_to_hbm [thread:$0]  %s457_s22, 128, %s781_s7, [#allocation4]   ;;  %v557_v54 = vpop.f32.mrf.mxu1 }
 0x2ab   :  { %681 = dma.done.wait [#allocation4], 128  }
 0x2ac   :  { %682 = vsyncadd [#allocation4], 4294967168 }
 0x2ad   :  { %463 = vsyncpa [#allocation3], 1 }
 0x2ae   :  { %464 = vsyncpa [#allocation6], 1 }
 0x2af   :  { %465 = vsyncpa [#allocation4], 1 }

</bundles_post_ra>
